<compile_context>
chip_gen: v7x
topology: tpu7x:2x2x1
jax: 0.10.0
libtpu: 0.0.40
codegen_flags: <defaults>
</compile_context>

<pallas_src>
import jax
import jax.numpy as jnp
from jax.experimental import pallas as pl
from jax.experimental.pallas import tpu as pltpu

_EPS = 1e-12  # F.normalize default eps


def _round_up(n, m):
    return ((n + m - 1) // m) * m


def _classifier_kernel(x_ref, w_ref, winv_ref, o_ref):
    # x_ref:    (TB, D)   input rows (raw, un-normalized)
    # w_ref:    (TC, D)   raw weight rows, native (C, D) layout
    # winv_ref: (1, TC)   precomputed 1 / max(||w_c||_2, eps)
    # o_ref:    (TB, TC)  cosine similarities
    x = x_ref[...].astype(jnp.float32)

    # Per-row inverse norms of x, folded into the epilogue:
    #   1 / max(||x||, eps) == rsqrt(max(sum(x^2), eps^2))   (sum(x^2) >= 0)
    x_ss = jnp.sum(x * x, axis=-1, keepdims=True)             # (TB, 1)
    xinv = jax.lax.rsqrt(jnp.maximum(x_ss, _EPS * _EPS))       # (TB, 1)

    # (TB, D) x (TC, D) contracting D on the MXU -- no transpose of W needed,
    # no normalized copies of x / W are built before the push.
    s = jax.lax.dot_general(
        x,
        w_ref[...].astype(jnp.float32),
        dimension_numbers=(((1,), (1,)), ((), ())),
        preferred_element_type=jnp.float32,
    )  # (TB, TC)

    # Column scale == row-normalizing W; row scale == row-normalizing x.
    o_ref[...] = (s * winv_ref[...] * xinv).astype(o_ref.dtype)


def _choose_tiles(B, C, D, itemsize=4):
    """Pick (TB, TC, B_pad, C_pad): sublane-granular TB, lane-dense TC."""
    TB = min(256, _round_up(B, 8))
    B_pad = _round_up(B, TB)

    budget = 2 * 1024 * 1024  # per-buffer VMEM budget (double-buffered by Pallas)
    C128 = _round_up(C, 128)
    if C128 * D * itemsize <= budget and TB * C128 * itemsize <= budget:
        # Single lane-dense C tile: minimal padding, widest unmasked stores.
        TC = C128
    else:
        # Pick the 128-multiple tile that minimizes padding (prefer larger).
        best = None
        for cand in (1024, 768, 512, 384, 256, 128):
            if cand * D * itemsize > budget or TB * cand * itemsize > budget:
                continue
            waste = _round_up(C, cand) - C
            key = (waste, -cand)
            if best is None or key < best[0]:
                best = (key, cand)
        TC = best[1] if best is not None else 128
    C_pad = _round_up(C, TC)
    return TB, TC, B_pad, C_pad


def classifier_forward(x, weight):
    """x: (B, 1, D) float32, weight: (C, D) float32 -> (B, 1, C) float32."""
    assert x.ndim == 3 and x.shape[1] == 1, "expected (B, 1, D) input"
    # TODO(synk): lin_blocks > 0 pre-blocks (_BatchNorm1d + Linear) are not
    # implemented; the module default (lin_blocks=0) has none.
    x2d = jnp.squeeze(x, axis=1)  # (B, D)
    B, D = x2d.shape
    C, Dw = weight.shape
    assert D == Dw

    # Per-class inverse L2 norms, computed once in the wrapper (weight is
    # static across calls at inference); the kernel streams only the raw W.
    w_ss = jnp.sum(weight.astype(jnp.float32) ** 2, axis=-1)        # (C,)
    winv = jax.lax.rsqrt(jnp.maximum(w_ss, _EPS * _EPS))[None, :]   # (1, C)

    TB, TC, B_pad, C_pad = _choose_tiles(B, C, D)

    x_p = jnp.pad(x2d, ((0, B_pad - B), (0, 0))) if B_pad != B else x2d
    w_p = jnp.pad(weight, ((0, C_pad - C), (0, 0))) if C_pad != C else weight
    winv_p = jnp.pad(winv, ((0, 0), (0, C_pad - C))) if C_pad != C else winv

    grid = (B_pad // TB, C_pad // TC)
    itemsize = jnp.dtype(jnp.float32).itemsize
    cost = pl.CostEstimate(
        flops=2 * B_pad * C_pad * D,
        transcendentals=0,
        bytes_accessed=(x_p.size * (C_pad // TC)
                        + (w_p.size + winv_p.size) * (B_pad // TB)
                        + B_pad * C_pad) * itemsize,
    )

    out = pl.pallas_call(
        _classifier_kernel,
        out_shape=jax.ShapeDtypeStruct((B_pad, C_pad), jnp.float32),
        grid_spec=pl.GridSpec(
            grid=grid,
            in_specs=[
                pl.BlockSpec((TB, D), lambda i, j: (i, 0)),   # x rows
                pl.BlockSpec((TC, D), lambda i, j: (j, 0)),   # weight rows
                pl.BlockSpec((1, TC), lambda i, j: (0, j)),   # inv weight norms
            ],
            out_specs=pl.BlockSpec((TB, TC), lambda i, j: (i, j)),
        ),
        compiler_params=pltpu.CompilerParams(
            dimension_semantics=("parallel", "parallel"),
        ),
        cost_estimate=cost,
    )(x_p, w_p, winv_p)

    # Drop padding, restore the size-1 time dim: (B, 1, C).
    return out[:B, None, :C]


def xavier_uniform(key, shape, dtype=jnp.float32):
    # nn.init.xavier_uniform_ for a (fan_out, fan_in) weight matrix.
    fan_out, fan_in = shape
    limit = (6.0 / (fan_in + fan_out)) ** 0.5
    return jax.random.uniform(key, shape, dtype, minval=-limit, maxval=limit)


def _reference(x, weight):
    xn = x[:, 0, :] / jnp.maximum(
        jnp.linalg.norm(x[:, 0, :], axis=-1, keepdims=True), _EPS)
    wn = weight / jnp.maximum(
        jnp.linalg.norm(weight, axis=-1, keepdims=True), _EPS)
    ref = jax.lax.dot_general(
        xn, wn, dimension_numbers=(((1,), (1,)), ((), ())),
        precision=jax.lax.Precision.HIGHEST,
        preferred_element_type=jnp.float32)
    return ref[:, None, :]


if __name__ == "__main__":
    key = jax.random.PRNGKey(0)
    k_x, k_w, k_x2, k_w2 = jax.random.split(key, 4)

    # Small, forward-consistent shapes: input_size=32, out_neurons=16, batch=4.
    B, D, C = 4, 32, 16
    x = jax.random.normal(k_x, (B, 1, D), dtype=jnp.float32)
    weight = xavier_uniform(k_w, (C, D))  # (out_neurons, input_size)

    out = jax.block_until_ready(classifier_forward(x, weight))
    ref = _reference(x, weight)
    assert out.shape == (B, 1, C)
    assert jnp.allclose(out, ref, atol=1e-4, rtol=1e-4)
    assert bool(jnp.all(out <= 1.0 + 1e-4)) and bool(jnp.all(out >= -1.0 - 1e-4))

    # Realistic ECAPA head shapes (lin_neurons=192, out_neurons=1211) to
    # exercise the padded / lane-dense single-C-tile path.
    B2, D2, C2 = 2, 192, 1211
    x2 = jax.random.normal(k_x2, (B2, 1, D2), dtype=jnp.float32)
    weight2 = xavier_uniform(k_w2, (C2, D2))
    out2 = jax.block_until_ready(classifier_forward(x2, weight2))
    ref2 = _reference(x2, weight2)
    assert out2.shape == (B2, 1, C2)
    assert jnp.allclose(out2, ref2, atol=1e-4, rtol=1e-4)

    print("KERNEL_OK")
</pallas_src>

<mosaic_0001>
module attributes {stable_mosaic.version = 11 : i64} {
  func.func @_classifier_kernel(%arg0: i32, %arg1: i32, %arg2: memref<8x32xf32, #tpu.memory_space<vmem>>, %arg3: memref<128x32xf32, #tpu.memory_space<vmem>>, %arg4: memref<1x128xf32, #tpu.memory_space<vmem>>, %arg5: memref<8x128xf32, #tpu.memory_space<vmem>>) attributes {dimension_semantics = [#tpu.dimension_semantics<parallel>, #tpu.dimension_semantics<parallel>], iteration_bounds = array<i64: 1, 1>, scalar_prefetch = 0 : i64, scratch_operands = 0 : i64, tpu.core_type = #tpu.core_type<tc>, window_params = [{transform_indices = @transform_0, window_bounds = array<i64: 8, 32>}, {transform_indices = @transform_1, window_bounds = array<i64: 128, 32>}, {transform_indices = @transform_2, window_bounds = array<i64: 1, 128>}, {transform_indices = @transform_3, window_bounds = array<i64: 8, 128>}]} {
    %c0 = arith.constant 0 : index
    %c0_0 = arith.constant 0 : index
    %0 = vector.load %arg2[%c0, %c0_0] : memref<8x32xf32, #tpu.memory_space<vmem>>, vector<8x32xf32>
    %1 = arith.mulf %0, %0 : vector<8x32xf32>
    %cst = arith.constant dense<0.000000e+00> : vector<8xf32>
    %2 = vector.multi_reduction <add>, %1, %cst [1] : vector<8x32xf32> to vector<8xf32>
    %3 = vector.shape_cast %2 : vector<8xf32> to vector<8x1xf32>
    %cst_1 = arith.constant 1.000000e-24 : f32
    %4 = vector.broadcast %cst_1 : f32 to vector<8x1xf32>
    %5 = arith.maximumf %3, %4 : vector<8x1xf32>
    %6 = math.rsqrt %5 : vector<8x1xf32>
    %c0_2 = arith.constant 0 : index
    %c0_3 = arith.constant 0 : index
    %7 = vector.load %arg3[%c0_2, %c0_3] : memref<128x32xf32, #tpu.memory_space<vmem>>, vector<128x32xf32>
    %cst_4 = arith.constant dense<0.000000e+00> : vector<8x128xf32>
    %8 = tpu.matmul %0, %7, %cst_4 {dimension_numbers = #tpu.dot_dimension_numbers<[1], [1], [0], [0], [0, 0, 1, 0], [], []>} : vector<8x32xf32>, vector<128x32xf32>, vector<8x128xf32> -> vector<8x128xf32>
    %c0_5 = arith.constant 0 : index
    %c0_6 = arith.constant 0 : index
    %9 = vector.load %arg4[%c0_5, %c0_6] : memref<1x128xf32, #tpu.memory_space<vmem>>, vector<1x128xf32>
    %10 = vector.broadcast %9 : vector<1x128xf32> to vector<8x128xf32>
    %11 = arith.mulf %8, %10 : vector<8x128xf32>
    %12 = vector.broadcast %6 : vector<8x1xf32> to vector<8x128xf32>
    %13 = arith.mulf %11, %12 : vector<8x128xf32>
    %c0_7 = arith.constant 0 : index
    %c0_8 = arith.constant 0 : index
    %14 = vector.load %arg5[%c0_7, %c0_8] : memref<8x128xf32, #tpu.memory_space<vmem>>, vector<8x128xf32>
    tpu.vector_store %arg5[%c0_7, %c0_8], %13 {strides = array<i32>} : memref<8x128xf32, #tpu.memory_space<vmem>>, vector<8x128xf32>,
    return
  }
  func.func @transform_0(%arg0: i32, %arg1: i32) -> (i32, i32) {
    %c0_i32 = arith.constant 0 : i32
    %c0_i32_0 = arith.constant 0 : i32
    return %arg0, %c0_i32 : i32, i32
  }
  func.func @transform_1(%arg0: i32, %arg1: i32) -> (i32, i32) {
    %c0_i32 = arith.constant 0 : i32
    %c0_i32_0 = arith.constant 0 : i32
    return %arg1, %c0_i32 : i32, i32
  }
  func.func @transform_2(%arg0: i32, %arg1: i32) -> (i32, i32) {
    %c0_i32 = arith.constant 0 : i32
    %c0_i32_0 = arith.constant 0 : i32
    return %c0_i32, %arg1 : i32, i32
  }
  func.func @transform_3(%arg0: i32, %arg1: i32) -> (i32, i32) {
    %c0_i32 = arith.constant 0 : i32
    return %arg0, %arg1 : i32, i32
  }
}

</mosaic_0001>

<bundles_post_ra>
// kernel: tpu_custom_call.1
= control target key start
LH: loop header
LB: loop body
LE: loop exit
PB: predicated region body
PF: predicated region fallthrough
CT: control target
= control target key end

     0   :  { %vm17_vm0 = vcmask 261120   ;;  %v316_v2 = vmov 0.0|0.0   ;;  %vm317_vm2 = vmmov 0   ;;  %v318_v5 = vmov 0.0   ;;  %s430_s0 = inlined_call_operand.vmem [shape: f32[8,32], index: 0, kind: input, shape index: {}]   ;;  %s431_s1 = inlined_call_operand.vmem [shape: f32[128,32], index: 1, kind: input, shape index: {}]   ;;  %s432_s2 = inlined_call_operand.vmem [shape: f32[1,128], index: 2, kind: input, shape index: {}]   ;;  %s433_s3 = inlined_call_operand.hbm [shape: f32[8,128], index: 3, kind: output, shape index: {}]  }
   0x1   :  { %v23_v0 = vld [vmem:[%s431_s1] sm:$0xff]  ;;  %v24_v1 = vld [vmem:[%s431_s1 + $0x8] sm:$0xff]  ;;  %254 = vmatprep.subr.bf16.mxu0 %v316_v2  ;;  %vm348_vm1 = vmpackc.low %vm17_vm0, %vm17_vm0  ;;  %251 = vmatprep.mubr.msk.f32.mxu0 %vm317_vm2, %v318_v5 }
   0x2   :  { %v255_v3 = vpack.c.bf16 %v24_v1, %v23_v0  ;;  %v25_v6 = vld [vmem:[%s431_s1 + $0x10] sm:$0xff]  ;;  %v26_v7 = vld [vmem:[%s431_s1 + $0x18] sm:$0xff]  ;;  %v15_v8 = vld [vmem:[%s430_s0] sm:$0xff] }
   0x3   :  { %v16_v9 = vmul.f32 %v15_v8, %v15_v8 }
   0x4   :  { %257 = vmatpush3.bf16.xpose.msk.msra.mxu0 %vm348_vm1, %v255_v3 }
   0x5   :  { %258 = vmatprep.subr.bf16.mxu0 %v316_v2 }
   0x6   :  { %8 = vsyncpa [#allocation3], 0  ;;  %v259_v10 = vpack.c.bf16 %v26_v7, %v25_v6  ;;  %v18_v11 = vsel %vm17_vm0, %v16_v9, 0.0  ;;  %v27_v12 = vld [vmem:[%s431_s1 + $0x20] sm:$0xff]  ;;  %v28_v13 = vld [vmem:[%s431_s1 + $0x28] sm:$0xff]  ;;  %s319_s20 = smov [#allocation2]  }
   0x7   :  { %19 = vadd.xlane.f32.xlu0 %v18_v11  ;;  %v263_v14 = vpack.c.bf16 %v28_v13, %v27_v12  ;;  %v29_v15 = vld [vmem:[%s431_s1 + $0x30] sm:$0xff]  ;;  %v30_v16 = vld [vmem:[%s431_s1 + $0x38] sm:$0xff]  ;;  %v31_v18 = vld [vmem:[%s431_s1 + $0x40] sm:$0xff]  ;;  %s176_s21 = sshll.u32 %s319_s20, 4  ;;  %s177_s21 = int_to_ptr.vmem [resolvable:$true] %s176_s21 }
   0x8   :  { %v267_v17 = vpack.c.bf16 %v30_v16, %v29_v15  ;;  %v32_v19 = vld [vmem:[%s431_s1 + $0x48] sm:$0xff]  ;;  %v33_v21 = vld [vmem:[%s431_s1 + $0x50] sm:$0xff]  ;;  %v34_v22 = vld [vmem:[%s431_s1 + $0x58] sm:$0xff]  ;;  %p297_p1 = scmp.lt.s32.totalorder %s177_s21, %s177_s21 }
   0x9   :  { %v271_v20 = vpack.c.bf16 %v32_v19, %v31_v18  ;;  %v275_v23 = vpack.c.bf16 %v34_v22, %v33_v21  ;;  %v35_v24 = vld [vmem:[%s431_s1 + $0x60] sm:$0xff]  ;;  %v36_v25 = vld [vmem:[%s431_s1 + $0x68] sm:$0xff]  ;;  %v37_v27 = vld [vmem:[%s431_s1 + $0x70] sm:$0xff] }
   0xa   :  { %v279_v26 = vpack.c.bf16 %v36_v25, %v35_v24  ;;  %v38_v28 = vld [vmem:[%s431_s1 + $0x78] sm:$0xff]  ;;  %v201_v32 = vld [vmem:[%s432_s2] ss:$0 sm:$0xff]  ;;  %s292_s1 = scalar_lea.vmem %s177_s21, 128 }
   0xb   :  { %v283_v29 = vpack.c.bf16 %v38_v28, %v37_v27  ;;  %p293_p0 = scmp.ne.s32.totalorder %s177_s21, %s292_s1  ;;  %p298_p2 = scmp.lt.s32.totalorder %s292_s1, %s292_s1 }
   0xc   :  { %261 = vmatpush3.bf16.xpose.msk.msra.mxu0 %vm348_vm1, %v259_v10 }
   0xd   :  { %262 = vmatprep.subr.bf16.mxu0 %v316_v2  ;;  %p299_p3 = por %p298_p2, %p297_p1 }
   0xf   :  { %p300_p4 = pnand %p299_p3, %p293_p0 }
  0x14   :  { %265 = vmatpush3.bf16.xpose.msk.msra.mxu0 %vm348_vm1, %v263_v14 }
  0x15   :  { %266 = vmatprep.subr.bf16.mxu0 %v316_v2 }
  0x1c   :  { %269 = vmatpush3.bf16.xpose.msk.msra.mxu0 %vm348_vm1, %v267_v17 }
  0x1d   :  { %270 = vmatprep.subr.bf16.mxu0 %v316_v2 }
  0x24   :  { %273 = vmatpush3.bf16.xpose.msk.msra.mxu0 %vm348_vm1, %v271_v20 }
  0x25   :  { %274 = vmatprep.subr.bf16.mxu0 %v316_v2 }
  0x2c   :  { %277 = vmatpush3.bf16.xpose.msk.msra.mxu0 %vm348_vm1, %v275_v23 }
  0x2d   :  { %278 = vmatprep.subr.bf16.mxu0 %v316_v2 }
  0x34   :  { %281 = vmatpush3.bf16.xpose.msk.msra.mxu0 %vm348_vm1, %v279_v26 }
  0x35   :  { %282 = vmatprep.subr.bf16.mxu0 %v316_v2 }
  0x3c   :  { %285 = vmatpush3.bf16.xpose.msk.msra.mxu0 %vm348_vm1, %v283_v29 }
  0x43   :  { %252 = vmatmul.mubr.msk.f32.vlgmr.msra.gmra.mrb[0].mxu0 %vm17_vm0, %v15_v8 }
  0x94   :  { %v20_v30 = vpop.xlane.xlu0 %19 }
  0x95   :  { %v21_v31 = vmax.f32 %v20_v30, 1e-24 }
  0x97   :  { %290 = vrsqrt.f32 %v21_v31 }
  0xa1   :  { %v291_v33 = vpop.eup %290 }
 0x116   :  { %v156_v34 = vpop.f32.mrb[0].mxu0 }
 0x117   :  { %v167_v35 = vmul.f32 %v201_v32, %v156_v34  ;;  %v253_v36 = vpop.f32.mrb[1].mxu0 }
 0x119   :  { %v168_v37 = vmul.f32 %v291_v33, %v167_v35 }
 0x11b   :  { %169 = vst [vmem:[#allocation2] sm:$0xff] %v168_v37 }
 0x11c   :  { %303 = shalt.err (!%p300_p4)
}
 0x11d   :  { %s304_s2 = scalar_lea.hbm %s433_s3, 128 }
 0x11e   :  { %p305_p5 = scmp.ne.s32.totalorder %s433_s3, %s304_s2  ;;  %p308_p6 = scmp.lt.u32.totalorder %s304_s2, %s433_s3 }
 0x120   :  { %p310_p7 = pnand %p308_p6, %p305_p5 }
 0x122   :  { %313 = shalt.err (!%p310_p7)
}
 0x123   :  { %179 = dma.vmem_to_hbm [thread:$0]  %s177_s21, 128, %s433_s3, [#allocation3]  }
 0x124   :  { %314 = dma.done.wait [#allocation3], 128  }
 0x125   :  { %315 = vsyncadd [#allocation3], 4294967168 }
 0x126   :  { %183 = vsyncpa [#allocation3], 1 }

</bundles_post_ra>
